<compile_context>
chip_gen: v5e
topology: v5e:2x2
jax: 0.10.0
libtpu: 0.0.40
codegen_flags: <defaults>
</compile_context>

<pallas_src>
import jax
import jax.numpy as jnp
from jax.experimental import pallas as pl
from jax.experimental.pallas import tpu as pltpu


def ncf_kernel(u_ref, v_ref,            # gathered embedding tiles (TB, K)
               w1u_ref, w1v_ref,        # split linear_1 weights (K, K) each
               b1_ref, w2_ref,          # bias (1, K), linear_2 weight row (1, K)
               out_ref):                # prediction row (1, TB), lane-dense
    u = u_ref[...]                      # (TB, K)
    v = v_ref[...]                      # (TB, K)
    # h1 = ReLU([u, v] @ W1^T + b1) computed without the lane-axis concat.
    h1 = jnp.dot(u, w1u_ref[...], preferred_element_type=jnp.float32)
    h1 = h1 + jnp.dot(v, w1v_ref[...], preferred_element_type=jnp.float32)
    h1 = jnp.maximum(h1 + b1_ref[...], 0.0)                    # (TB, K)
    # Final K -> 1 projection, produced directly as a lane-dense (1, TB) row.
    out_ref[...] = jnp.einsum('ok,tk->ot', w2_ref[...], h1,
                              preferred_element_type=jnp.float32)


def ncf_forward(x, user_table, item_table, w1t, b1, w2t, *, tb=256):
    """x: [B, 2] int32. Returns (out [B,1], user_embed [B,K], item_embed [B,K])."""
    B = x.shape[0]
    K = user_table.shape[1]
    uidx = x[:, 0].astype(jnp.int32)
    iidx = x[:, 1].astype(jnp.int32)

    # Embedding gather in the wrapper (these are also returned directly).
    user_embed = jnp.take(user_table, uidx, axis=0)             # (B, K)
    item_embed = jnp.take(item_table, iidx, axis=0)             # (B, K)

    # Pad the batch to a multiple of the tile size (MXU-friendly M dimension).
    n_tiles = max(1, (B + tb - 1) // tb)
    b_pad = n_tiles * tb
    pad = b_pad - B
    u_p = jnp.pad(user_embed, ((0, pad), (0, 0))) if pad else user_embed
    i_p = jnp.pad(item_embed, ((0, pad), (0, 0))) if pad else item_embed

    # Split W1^T into its user/item halves so no in-kernel concat is needed.
    w1u = w1t[:K, :]                                            # (K, K)
    w1v = w1t[K:, :]                                            # (K, K)
    b1_row = b1.reshape(1, K)                                   # (1, K)
    w2_row = w2t.reshape(1, K)                                  # (1, K)

    out2d = pl.pallas_call(
        ncf_kernel,
        out_shape=jax.ShapeDtypeStruct((n_tiles, tb), jnp.float32),
        grid=(n_tiles,),
        in_specs=[
            # batch tiles of gathered embeddings
            pl.BlockSpec((tb, K), lambda i: (i, 0)),
            pl.BlockSpec((tb, K), lambda i: (i, 0)),
            # parameters: full blocks, resident in VMEM across all tiles
            pl.BlockSpec((K, K), lambda i: (0, 0)),
            pl.BlockSpec((K, K), lambda i: (0, 0)),
            pl.BlockSpec((1, K), lambda i: (0, 0)),
            pl.BlockSpec((1, K), lambda i: (0, 0)),
        ],
        out_specs=pl.BlockSpec((1, tb), lambda i: (i, 0)),
        compiler_params=pltpu.CompilerParams(
            dimension_semantics=("parallel",)),
    )(u_p, i_p, w1u, w1v, b1_row, w2_row)

    out = out2d.reshape(b_pad, 1)[:B]                           # (B, 1)
    return out, user_embed, item_embed


def ncf_reference(x, user_table, item_table, w1t, b1, w2t):
    """Pure-JAX reference mirroring the PyTorch forward."""
    u = user_table[x[:, 0]]
    v = item_table[x[:, 1]]
    z = jnp.concatenate([u, v], axis=1)
    h1 = jnp.maximum(z @ w1t + b1.reshape(1, -1), 0.0)
    out = h1 @ w2t
    return out, u, v


if __name__ == "__main__":
    num_users, num_items, K = 10, 12, 32
    B = 8

    key = jax.random.PRNGKey(0)
    k_u, k_i, k_w1, k_b1, k_w2, k_uidx, k_iidx = jax.random.split(key, 7)

    # Deterministic parameter init (shapes follow the PyTorch module __init__).
    user_table = jax.random.normal(k_u, (num_users, K), dtype=jnp.float32)
    item_table = jax.random.normal(k_i, (num_items, K), dtype=jnp.float32)
    w1t = jax.random.normal(k_w1, (2 * K, K), dtype=jnp.float32) * 0.1  # Linear(2K->K) weight, transposed
    b1 = jax.random.normal(k_b1, (K,), dtype=jnp.float32) * 0.1          # Linear(2K->K) bias
    w2t = jax.random.normal(k_w2, (K, 1), dtype=jnp.float32) * 0.1       # Linear(K->1, no bias) weight, transposed

    # Input x: [B, 2] (user_idx, item_idx)
    user_idx = jax.random.randint(k_uidx, (B,), 0, num_users, dtype=jnp.int32)
    item_idx = jax.random.randint(k_iidx, (B,), 0, num_items, dtype=jnp.int32)
    x = jnp.stack([user_idx, item_idx], axis=1)

    out, u_emb, i_emb = ncf_forward(x, user_table, item_table, w1t, b1, w2t)
    jax.block_until_ready((out, u_emb, i_emb))

    # Correctness check against the pure-JAX reference.
    out_r, u_r, i_r = ncf_reference(x, user_table, item_table, w1t, b1, w2t)
    assert out.shape == (B, 1), f"bad out shape {out.shape}"
    assert jnp.allclose(out, out_r, atol=1e-5), "out mismatch"
    assert jnp.allclose(u_emb, u_r), "user_embed mismatch"
    assert jnp.allclose(i_emb, i_r), "item_embed mismatch"

    print("KERNEL_OK")
</pallas_src>

<mosaic_0001>
module attributes {stable_mosaic.version = 11 : i64} {
  func.func @ncf_kernel(%arg0: i32, %arg1: memref<256x32xf32, #tpu.memory_space<vmem>>, %arg2: memref<256x32xf32, #tpu.memory_space<vmem>>, %arg3: memref<32x32xf32, #tpu.memory_space<vmem>>, %arg4: memref<32x32xf32, #tpu.memory_space<vmem>>, %arg5: memref<1x32xf32, #tpu.memory_space<vmem>>, %arg6: memref<1x32xf32, #tpu.memory_space<vmem>>, %arg7: memref<1x256xf32, #tpu.memory_space<vmem>>) attributes {dimension_semantics = [#tpu.dimension_semantics<parallel>], iteration_bounds = array<i64: 1>, scalar_prefetch = 0 : i64, scratch_operands = 0 : i64, tpu.core_type = #tpu.core_type<tc>, window_params = [{transform_indices = @transform_0, window_bounds = array<i64: 256, 32>}, {transform_indices = @transform_1, window_bounds = array<i64: 256, 32>}, {pipeline_mode = #tpu.pipeline_mode<synchronous>, transform_indices = @transform_2, window_bounds = array<i64: 32, 32>}, {pipeline_mode = #tpu.pipeline_mode<synchronous>, transform_indices = @transform_3, window_bounds = array<i64: 32, 32>}, {pipeline_mode = #tpu.pipeline_mode<synchronous>, transform_indices = @transform_4, window_bounds = array<i64: 1, 32>}, {pipeline_mode = #tpu.pipeline_mode<synchronous>, transform_indices = @transform_5, window_bounds = array<i64: 1, 32>}, {transform_indices = @transform_6, window_bounds = array<i64: 1, 256>}]} {
    %c0 = arith.constant 0 : index
    %c0_0 = arith.constant 0 : index
    %0 = vector.load %arg1[%c0, %c0_0] : memref<256x32xf32, #tpu.memory_space<vmem>>, vector<256x32xf32>
    %c0_1 = arith.constant 0 : index
    %c0_2 = arith.constant 0 : index
    %1 = vector.load %arg2[%c0_1, %c0_2] : memref<256x32xf32, #tpu.memory_space<vmem>>, vector<256x32xf32>
    %c0_3 = arith.constant 0 : index
    %c0_4 = arith.constant 0 : index
    %2 = vector.load %arg3[%c0_3, %c0_4] : memref<32x32xf32, #tpu.memory_space<vmem>>, vector<32x32xf32>
    %cst = arith.constant dense<0.000000e+00> : vector<256x32xf32>
    %3 = tpu.matmul %0, %2, %cst {dimension_numbers = #tpu.dot_dimension_numbers<[1], [0], [0], [1], [0, 0, 1, 1], [], []>} : vector<256x32xf32>, vector<32x32xf32>, vector<256x32xf32> -> vector<256x32xf32>
    %c0_5 = arith.constant 0 : index
    %c0_6 = arith.constant 0 : index
    %4 = vector.load %arg4[%c0_5, %c0_6] : memref<32x32xf32, #tpu.memory_space<vmem>>, vector<32x32xf32>
    %cst_7 = arith.constant dense<0.000000e+00> : vector<256x32xf32>
    %5 = tpu.matmul %1, %4, %cst_7 {dimension_numbers = #tpu.dot_dimension_numbers<[1], [0], [0], [1], [0, 0, 1, 1], [], []>} : vector<256x32xf32>, vector<32x32xf32>, vector<256x32xf32> -> vector<256x32xf32>
    %6 = arith.addf %3, %5 : vector<256x32xf32>
    %c0_8 = arith.constant 0 : index
    %c0_9 = arith.constant 0 : index
    %7 = vector.load %arg5[%c0_8, %c0_9] : memref<1x32xf32, #tpu.memory_space<vmem>>, vector<1x32xf32>
    %8 = vector.broadcast %7 : vector<1x32xf32> to vector<256x32xf32>
    %9 = arith.addf %6, %8 : vector<256x32xf32>
    %cst_10 = arith.constant 0.000000e+00 : f32
    %10 = vector.broadcast %cst_10 : f32 to vector<256x32xf32>
    %11 = arith.maximumf %9, %10 : vector<256x32xf32>
    %c0_11 = arith.constant 0 : index
    %c0_12 = arith.constant 0 : index
    %12 = vector.load %arg6[%c0_11, %c0_12] : memref<1x32xf32, #tpu.memory_space<vmem>>, vector<1x32xf32>
    "tpu.trace_start"() <{level = 10 : i32, message = "ok,tk->ot"}> : () -> ()
    %cst_13 = arith.constant dense<0.000000e+00> : vector<1x256xf32>
    %13 = tpu.matmul %12, %11, %cst_13 {dimension_numbers = #tpu.dot_dimension_numbers<[1], [1], [0], [0], [0, 0, 1, 0], [], []>} : vector<1x32xf32>, vector<256x32xf32>, vector<1x256xf32> -> vector<1x256xf32>
    "tpu.trace_stop"() : () -> ()
    %c0_14 = arith.constant 0 : index
    %c0_15 = arith.constant 0 : index
    %14 = vector.load %arg7[%c0_14, %c0_15] : memref<1x256xf32, #tpu.memory_space<vmem>>, vector<1x256xf32>
    tpu.vector_store %arg7[%c0_14, %c0_15], %13 {strides = array<i32>} : memref<1x256xf32, #tpu.memory_space<vmem>>, vector<1x256xf32>,
    return
  }
  func.func @transform_0(%arg0: i32) -> (i32, i32) {
    %c0_i32 = arith.constant 0 : i32
    %c0_i32_0 = arith.constant 0 : i32
    return %arg0, %c0_i32 : i32, i32
  }
  func.func @transform_1(%arg0: i32) -> (i32, i32) {
    %c0_i32 = arith.constant 0 : i32
    %c0_i32_0 = arith.constant 0 : i32
    return %arg0, %c0_i32 : i32, i32
  }
  func.func @transform_2(%arg0: i32) -> (i32, i32) {
    %c0_i32 = arith.constant 0 : i32
    %c0_i32_0 = arith.constant 0 : i32
    %c0_i32_1 = arith.constant 0 : i32
    return %c0_i32, %c0_i32_0 : i32, i32
  }
  func.func @transform_3(%arg0: i32) -> (i32, i32) {
    %c0_i32 = arith.constant 0 : i32
    %c0_i32_0 = arith.constant 0 : i32
    %c0_i32_1 = arith.constant 0 : i32
    return %c0_i32, %c0_i32_0 : i32, i32
  }
  func.func @transform_4(%arg0: i32) -> (i32, i32) {
    %c0_i32 = arith.constant 0 : i32
    %c0_i32_0 = arith.constant 0 : i32
    %c0_i32_1 = arith.constant 0 : i32
    return %c0_i32, %c0_i32_0 : i32, i32
  }
  func.func @transform_5(%arg0: i32) -> (i32, i32) {
    %c0_i32 = arith.constant 0 : i32
    %c0_i32_0 = arith.constant 0 : i32
    %c0_i32_1 = arith.constant 0 : i32
    return %c0_i32, %c0_i32_0 : i32, i32
  }
  func.func @transform_6(%arg0: i32) -> (i32, i32) {
    %c0_i32 = arith.constant 0 : i32
    %c0_i32_0 = arith.constant 0 : i32
    return %arg0, %c0_i32 : i32, i32
  }
}

</mosaic_0001>

<bundles_post_ra>
// kernel: tpu_custom_call.1
= control target key start
LH: loop header
LB: loop body
LE: loop exit
PB: predicated region body
PF: predicated region fallthrough
CT: control target
= control target key end

     0   :  { %vm96_vm0 = vcmask 261120   ;;  %s1334_s0 = inlined_call_operand.vmem [shape: f32[256,32], index: 0, kind: input, shape index: {}]   ;;  %s1335_s1 = inlined_call_operand.vmem [shape: f32[256,32], index: 1, kind: input, shape index: {}]   ;;  %s1336_s2 = inlined_call_operand.vmem [shape: f32[32,32], index: 2, kind: input, shape index: {}]   ;;  %s1337_s3 = inlined_call_operand.vmem [shape: f32[32,32], index: 3, kind: input, shape index: {}]   ;;  %s1338_s4 = inlined_call_operand.vmem [shape: f32[1,32], index: 4, kind: input, shape index: {}]   ;;  %s1339_s5 = inlined_call_operand.vmem [shape: f32[1,32], index: 5, kind: input, shape index: {}]   ;;  %s1340_s6 = inlined_call_operand.hbm [shape: f32[1,256], index: 6, kind: output, shape index: {}]  }
   0x1   :  { %v95_v0 = vld [vmem:[%s1337_s3 + $0x18] sm:$0xff]  ;;  %v94_v2 = vld [vmem:[%s1337_s3 + $0x10] sm:$0xff]  ;;  %v93_v4 = vld [vmem:[%s1337_s3 + $0x8] sm:$0xff] }
   0x2   :  { %v91_v1 = vld [vmem:[%s1336_s2 + $0x18] sm:$0xff]  ;;  %205 = vmatpush.msra.mxu0 %v95_v0  ;;  %v90_v3 = vld [vmem:[%s1336_s2 + $0x10] sm:$0xff]  ;;  %v89_v5 = vld [vmem:[%s1336_s2 + $0x8] sm:$0xff]  ;;  %848 = vmatpush.msra.mxu2 %v95_v0 }
   0x3   :  { %414 = vmatpush.msra.mxu1 %v91_v1  ;;  %852 = vmatpush.msra.mxu3 %v91_v1  ;;  %v92_v6 = vld [vmem:[%s1337_s3] sm:$0xff]  ;;  %v41_v10 = vld [vmem:[%s1334_s0 + $0x88] sm:$0xff]  ;;  %v75_v11 = vld [vmem:[%s1335_s1 + $0x98] sm:$0xff] }
   0x4   :  { %206 = vmatpush.msra.mxu0 %v94_v2  ;;  %v88_v7 = vld [vmem:[%s1336_s2] sm:$0xff]  ;;  %849 = vmatpush.msra.mxu2 %v94_v2 }
   0x5   :  { %415 = vmatpush.msra.mxu1 %v90_v3  ;;  %853 = vmatpush.msra.mxu3 %v90_v3  ;;  %v56_v8 = vld [vmem:[%s1335_s1] sm:$0xff] }
   0x6   :  { %207 = vmatpush.msra.mxu0 %v93_v4  ;;  %v24_v9 = vld [vmem:[%s1334_s0] sm:$0xff]  ;;  %850 = vmatpush.msra.mxu2 %v93_v4 }
   0x7   :  { %416 = vmatpush.msra.mxu1 %v89_v5  ;;  %854 = vmatpush.msra.mxu3 %v89_v5 }
   0x8   :  { %208 = vmatpush.msra.mxu0 %v92_v6 }
   0x9   :  { %417 = vmatpush.msra.mxu1 %v88_v7  ;;  %855 = vmatpush.msra.mxu3 %v88_v7 }
   0xa   :  { %750 = vmatmul.msk.f32.vlgmr.msra.gmra.mxu0 %vm96_vm0, %v56_v8  ;;  %782 = vmatmul.msk.f32.vlgmr.msra.gmra.mxu1 %vm96_vm0, %v24_v9 }
   0xb   :  { %799 = vmatmul.msk.f32.vlgmr.msra.gmra.mxu3 %vm96_vm0, %v41_v10 }
   0xc   :  { %11 = vsyncpa [#allocation3], 0  ;;  %851 = vmatpush.msra.mxu2 %v92_v6  ;;  %v57_v12 = vld [vmem:[%s1335_s1 + $0x8] sm:$0xff]  ;;  %v42_v14 = vld [vmem:[%s1334_s0 + $0x90] sm:$0xff]  ;;  %s884_s12 = smov [#allocation2]   ;;  %s741_s16 = sshll.u32 %s1340_s6, 4  ;;  %s742_s16 = int_to_ptr.hbm [resolvable:$true] %s741_s16 }
   0xd   :  { %769 = vmatmul.msk.f32.vlgmr.msra.gmra.mxu2 %vm96_vm0, %v75_v11  ;;  %v25_v13 = vld [vmem:[%s1334_s0 + $0x8] sm:$0xff]  ;;  %v76_v15 = vld [vmem:[%s1335_s1 + $0xa0] sm:$0xff]  ;;  %v58_v16 = vld [vmem:[%s1335_s1 + $0x10] sm:$0xff]  ;;  %s739_s13 = sshll.u32 %s884_s12, 4  ;;  %vm726_vm1 = vcmask 1040384   ;;  %s740_s13 = int_to_ptr.vmem [resolvable:$true] %s739_s13 }
   0xe   :  { %v26_v17 = vld [vmem:[%s1334_s0 + $0x10] sm:$0xff]  ;;  %v43_v18 = vld [vmem:[%s1334_s0 + $0x98] sm:$0xff]  ;;  %v77_v19 = vld [vmem:[%s1335_s1 + $0xa8] sm:$0xff] }
   0xf   :  { %v59_v20 = vld [vmem:[%s1335_s1 + $0x18] sm:$0xff]  ;;  %v44_v22 = vld [vmem:[%s1334_s0 + $0xa0] sm:$0xff]  ;;  %v78_v23 = vld [vmem:[%s1335_s1 + $0xb0] sm:$0xff] }
  0x10   :  { %v27_v21 = vld [vmem:[%s1334_s0 + $0x18] sm:$0xff]  ;;  %v60_v24 = vld [vmem:[%s1335_s1 + $0x20] sm:$0xff]  ;;  %v45_v26 = vld [vmem:[%s1334_s0 + $0xa8] sm:$0xff] }
  0x11   :  { %v28_v25 = vld [vmem:[%s1334_s0 + $0x20] sm:$0xff]  ;;  %v79_v27 = vld [vmem:[%s1335_s1 + $0xb8] sm:$0xff]  ;;  %v61_v28 = vld [vmem:[%s1335_s1 + $0x28] sm:$0xff] }
  0x12   :  { %751 = vmatmul.msk.f32.gmra.mxu0 %vm96_vm0, %v57_v12  ;;  %783 = vmatmul.msk.f32.gmra.mxu1 %vm96_vm0, %v25_v13  ;;  %v29_v29 = vld [vmem:[%s1334_s0 + $0x28] sm:$0xff]  ;;  %v46_v30 = vld [vmem:[%s1334_s0 + $0xb0] sm:$0xff]  ;;  %v80_v31 = vld [vmem:[%s1335_s1 + $0xc0] sm:$0xff] }
  0x13   :  { %800 = vmatmul.msk.f32.gmra.mxu3 %vm96_vm0, %v42_v14  ;;  %v62_v32 = vld [vmem:[%s1335_s1 + $0x30] sm:$0xff]  ;;  %v47_v34 = vld [vmem:[%s1334_s0 + $0xb8] sm:$0xff]  ;;  %v81_v35 = vld [vmem:[%s1335_s1 + $0xc8] sm:$0xff] }
  0x14   :  { %v30_v33 = vld [vmem:[%s1334_s0 + $0x30] sm:$0xff]  ;;  %v63_v36 = vld [vmem:[%s1335_s1 + $0x38] sm:$0xff]  ;;  %v48_v38 = vld [vmem:[%s1334_s0 + $0xc0] sm:$0xff] }
  0x15   :  { %770 = vmatmul.msk.f32.gmra.mxu2 %vm96_vm0, %v76_v15  ;;  %v31_v37 = vld [vmem:[%s1334_s0 + $0x38] sm:$0xff]  ;;  %v82_v39 = vld [vmem:[%s1335_s1 + $0xd0] sm:$0xff]  ;;  %v64_v40 = vld [vmem:[%s1335_s1 + $0x40] sm:$0xff] }
  0x16   :  { %v32_v41 = vld [vmem:[%s1334_s0 + $0x40] sm:$0xff]  ;;  %v49_v42 = vld [vmem:[%s1334_s0 + $0xc8] sm:$0xff]  ;;  %v83_v43 = vld [vmem:[%s1335_s1 + $0xd8] sm:$0xff] }
  0x17   :  { %v65_v44 = vld [vmem:[%s1335_s1 + $0x48] sm:$0xff]  ;;  %v50_v46 = vld [vmem:[%s1334_s0 + $0xd0] sm:$0xff]  ;;  %v84_v47 = vld [vmem:[%s1335_s1 + $0xe0] sm:$0xff] }
  0x18   :  { %v33_v45 = vld [vmem:[%s1334_s0 + $0x48] sm:$0xff]  ;;  %v66_v48 = vld [vmem:[%s1335_s1 + $0x50] sm:$0xff]  ;;  %v51_v50 = vld [vmem:[%s1334_s0 + $0xd8] sm:$0xff] }
  0x19   :  { %v34_v49 = vld [vmem:[%s1334_s0 + $0x50] sm:$0xff]  ;;  %v85_v51 = vld [vmem:[%s1335_s1 + $0xe8] sm:$0xff]  ;;  %v67_v52 = vld [vmem:[%s1335_s1 + $0x58] sm:$0xff] }
  0x1a   :  { %752 = vmatmul.msk.f32.gmra.mxu0 %vm96_vm0, %v58_v16  ;;  %784 = vmatmul.msk.f32.gmra.mxu1 %vm96_vm0, %v26_v17  ;;  %v35_v53 = vld [vmem:[%s1334_s0 + $0x58] sm:$0xff]  ;;  %v52_v54 = vld [vmem:[%s1334_s0 + $0xe0] sm:$0xff]  ;;  %v86_v55 = vld [vmem:[%s1335_s1 + $0xf0] sm:$0xff] }
  0x1b   :  { %801 = vmatmul.msk.f32.gmra.mxu3 %vm96_vm0, %v43_v18  ;;  %v68_v56 = vld [vmem:[%s1335_s1 + $0x60] sm:$0xff]  ;;  %v53_v58 = vld [vmem:[%s1334_s0 + $0xe8] sm:$0xff]  ;;  %v87_v59 = vld [vmem:[%s1335_s1 + $0xf8] sm:$0xff] }
  0x1c   :  { %v36_v57 = vld [vmem:[%s1334_s0 + $0x60] sm:$0xff]  ;;  %v69_v60 = vld [vmem:[%s1335_s1 + $0x68] sm:$0xff]  ;;  %v54_v62 = vld [vmem:[%s1334_s0 + $0xf0] sm:$0xff] }
  0x1d   :  { %771 = vmatmul.msk.f32.gmra.mxu2 %vm96_vm0, %v77_v19  ;;  %v37_v61 = vld [vmem:[%s1334_s0 + $0x68] sm:$0xff]  ;;  %v70_v63 = vld [vmem:[%s1335_s1 + $0x70] sm:$0xff]  ;;  %v55_v1 = vld [vmem:[%s1334_s0 + $0xf8] sm:$0xff] }
  0x1e   :  { %v38_v0 = vld [vmem:[%s1334_s0 + $0x70] sm:$0xff]  ;;  %v71_v2 = vld [vmem:[%s1335_s1 + $0x78] sm:$0xff]  ;;  %v72_v5 = vld [vmem:[%s1335_s1 + $0x80] sm:$0xff] }
  0x1f   :  { %v39_v3 = vld [vmem:[%s1334_s0 + $0x78] sm:$0xff]  ;;  %v40_v7 = vld [vmem:[%s1334_s0 + $0x80] sm:$0xff]  ;;  %v73_v11 = vld [vmem:[%s1335_s1 + $0x88] sm:$0xff] }
  0x20   :  { %v74_v17 = vld [vmem:[%s1335_s1 + $0x90] sm:$0xff] }
  0x22   :  { %753 = vmatmul.msk.f32.gmra.mxu0 %vm96_vm0, %v59_v20  ;;  %785 = vmatmul.msk.f32.gmra.mxu1 %vm96_vm0, %v27_v21 }
  0x23   :  { %802 = vmatmul.msk.f32.gmra.mxu3 %vm96_vm0, %v44_v22 }
  0x25   :  { %772 = vmatmul.msk.f32.gmra.mxu2 %vm96_vm0, %v78_v23 }
  0x2a   :  { %754 = vmatmul.msk.f32.gmra.mxu0 %vm96_vm0, %v60_v24  ;;  %786 = vmatmul.msk.f32.gmra.mxu1 %vm96_vm0, %v28_v25 }
  0x2b   :  { %803 = vmatmul.msk.f32.gmra.mxu3 %vm96_vm0, %v45_v26 }
  0x2d   :  { %773 = vmatmul.msk.f32.gmra.mxu2 %vm96_vm0, %v79_v27 }
  0x32   :  { %755 = vmatmul.msk.f32.gmra.mxu0 %vm96_vm0, %v61_v28  ;;  %787 = vmatmul.msk.f32.gmra.mxu1 %vm96_vm0, %v29_v29 }
  0x33   :  { %804 = vmatmul.msk.f32.gmra.mxu3 %vm96_vm0, %v46_v30 }
  0x35   :  { %774 = vmatmul.msk.f32.gmra.mxu2 %vm96_vm0, %v80_v31 }
  0x3a   :  { %756 = vmatmul.msk.f32.gmra.mxu0 %vm96_vm0, %v62_v32  ;;  %788 = vmatmul.msk.f32.gmra.mxu1 %vm96_vm0, %v30_v33 }
  0x3b   :  { %805 = vmatmul.msk.f32.gmra.mxu3 %vm96_vm0, %v47_v34 }
  0x3d   :  { %775 = vmatmul.msk.f32.gmra.mxu2 %vm96_vm0, %v81_v35 }
  0x42   :  { %757 = vmatmul.msk.f32.gmra.mxu0 %vm96_vm0, %v63_v36  ;;  %789 = vmatmul.msk.f32.gmra.mxu1 %vm96_vm0, %v31_v37 }
  0x43   :  { %806 = vmatmul.msk.f32.gmra.mxu3 %vm96_vm0, %v48_v38 }
  0x45   :  { %776 = vmatmul.msk.f32.gmra.mxu2 %vm96_vm0, %v82_v39 }
  0x4a   :  { %758 = vmatmul.msk.f32.gmra.mxu0 %vm96_vm0, %v64_v40  ;;  %790 = vmatmul.msk.f32.gmra.mxu1 %vm96_vm0, %v32_v41 }
  0x4b   :  { %807 = vmatmul.msk.f32.gmra.mxu3 %vm96_vm0, %v49_v42 }
  0x4d   :  { %777 = vmatmul.msk.f32.gmra.mxu2 %vm96_vm0, %v83_v43 }
  0x52   :  { %759 = vmatmul.msk.f32.gmra.mxu0 %vm96_vm0, %v65_v44  ;;  %791 = vmatmul.msk.f32.gmra.mxu1 %vm96_vm0, %v33_v45 }
  0x53   :  { %808 = vmatmul.msk.f32.gmra.mxu3 %vm96_vm0, %v50_v46 }
  0x55   :  { %778 = vmatmul.msk.f32.gmra.mxu2 %vm96_vm0, %v84_v47 }
  0x5a   :  { %760 = vmatmul.msk.f32.gmra.mxu0 %vm96_vm0, %v66_v48  ;;  %792 = vmatmul.msk.f32.gmra.mxu1 %vm96_vm0, %v34_v49 }
  0x5b   :  { %809 = vmatmul.msk.f32.gmra.mxu3 %vm96_vm0, %v51_v50 }
  0x5d   :  { %779 = vmatmul.msk.f32.gmra.mxu2 %vm96_vm0, %v85_v51 }
  0x62   :  { %761 = vmatmul.msk.f32.gmra.mxu0 %vm96_vm0, %v67_v52  ;;  %793 = vmatmul.msk.f32.gmra.mxu1 %vm96_vm0, %v35_v53 }
  0x63   :  { %810 = vmatmul.msk.f32.gmra.mxu3 %vm96_vm0, %v52_v54 }
  0x65   :  { %780 = vmatmul.msk.f32.gmra.mxu2 %vm96_vm0, %v86_v55 }
  0x6a   :  { %762 = vmatmul.msk.f32.gmra.mxu0 %vm96_vm0, %v68_v56  ;;  %794 = vmatmul.msk.f32.gmra.mxu1 %vm96_vm0, %v36_v57 }
  0x6b   :  { %811 = vmatmul.msk.f32.gmra.mxu3 %vm96_vm0, %v53_v58 }
  0x6d   :  { %781 = vmatmul.msk.f32.gmra.mxu2 %vm96_vm0, %v87_v59 }
  0x72   :  { %763 = vmatmul.msk.f32.gmra.mxu0 %vm96_vm0, %v69_v60  ;;  %795 = vmatmul.msk.f32.gmra.mxu1 %vm96_vm0, %v37_v61 }
  0x73   :  { %812 = vmatmul.msk.f32.gmra.mxu3 %vm96_vm0, %v54_v62 }
  0x7a   :  { %764 = vmatmul.msk.f32.gmra.mxu0 %vm96_vm0, %v70_v63  ;;  %796 = vmatmul.msk.f32.gmra.mxu1 %vm96_vm0, %v38_v0 }
  0x7b   :  { %813 = vmatmul.msk.f32.gmra.mxu3 %vm96_vm0, %v55_v1 }
  0x82   :  { %765 = vmatmul.msk.f32.gmra.mxu0 %vm96_vm0, %v71_v2  ;;  %797 = vmatmul.msk.f32.gmra.mxu1 %vm96_vm0, %v39_v3 }
  0x87   :  { %v210_v4 = vpop.f32.mrf.mxu0  ;;  %v419_v6 = vpop.f32.mrf.mxu1 }
  0x88   :  { %v1190_v8 = vadd.f32 %v419_v6, %v210_v4 }
  0x8a   :  { %766 = vmatmul.msk.f32.gmra.mxu0 %vm96_vm0, %v72_v5  ;;  %798 = vmatmul.msk.f32.gmra.mxu1 %vm96_vm0, %v40_v7 }
  0x8e   :  { %v1194_v9 = vpop.f32.mrf.mxu3 }
  0x8f   :  { %v213_v10 = vpop.f32.mrf.mxu0  ;;  %v422_v12 = vpop.f32.mrf.mxu1 }
  0x90   :  { %v267_v13 = vpop.f32.mrf.mxu2  ;;  %v1199_v14 = vadd.f32 %v422_v12, %v213_v10 }
  0x92   :  { %767 = vmatmul.msk.f32.gmra.mxu0 %vm96_vm0, %v73_v11 }
  0x96   :  { %v1202_v15 = vpop.f32.mrf.mxu3 }
  0x97   :  { %v216_v16 = vpop.f32.mrf.mxu0  ;;  %v425_v18 = vpop.f32.mrf.mxu1 }
  0x98   :  { %v270_v19 = vpop.f32.mrf.mxu2  ;;  %v1207_v20 = vadd.f32 %v425_v18, %v216_v16 }
  0x9a   :  { %768 = vmatmul.msk.f32.gmra.mxu0 %vm96_vm0, %v74_v17 }
  0x9e   :  { %v476_v21 = vpop.f32.mrf.mxu3 }
  0x9f   :  { %v1210_v22 = vadd.f32 %v476_v21, %v267_v13  ;;  %v219_v23 = vpop.f32.mrf.mxu0  ;;  %v428_v24 = vpop.f32.mrf.mxu1 }
  0xa0   :  { %v273_v25 = vpop.f32.mrf.mxu2  ;;  %v1212_v26 = vadd.f32 %v428_v24, %v219_v23 }
  0xa6   :  { %v479_v27 = vpop.f32.mrf.mxu3 }
  0xa7   :  { %v1214_v28 = vadd.f32 %v479_v27, %v270_v19  ;;  %v222_v29 = vpop.f32.mrf.mxu0  ;;  %v431_v30 = vpop.f32.mrf.mxu1 }
  0xa8   :  { %v276_v31 = vpop.f32.mrf.mxu2  ;;  %v1216_v32 = vadd.f32 %v431_v30, %v222_v29 }
  0xae   :  { %v482_v33 = vpop.f32.mrf.mxu3 }
  0xaf   :  { %v1218_v34 = vadd.f32 %v482_v33, %v273_v25  ;;  %v225_v35 = vpop.f32.mrf.mxu0  ;;  %v434_v36 = vpop.f32.mrf.mxu1  ;;  %v1241_v25 = vld [vmem:[%s1338_s4] ss:$0 sm:$0xff] }
  0xb0   :  { %v279_v37 = vpop.f32.mrf.mxu2  ;;  %v1220_v38 = vadd.f32 %v434_v36, %v225_v35 }
  0xb6   :  { %v485_v39 = vpop.f32.mrf.mxu3 }
  0xb7   :  { %v1222_v40 = vadd.f32 %v485_v39, %v276_v31  ;;  %v228_v41 = vpop.f32.mrf.mxu0  ;;  %v437_v42 = vpop.f32.mrf.mxu1 }
  0xb8   :  { %v282_v43 = vpop.f32.mrf.mxu2  ;;  %v1224_v44 = vadd.f32 %v437_v42, %v228_v41 }
  0xbe   :  { %v488_v45 = vpop.f32.mrf.mxu3 }
  0xbf   :  { %v1226_v46 = vadd.f32 %v488_v45, %v279_v37  ;;  %v231_v47 = vpop.f32.mrf.mxu0  ;;  %v440_v48 = vpop.f32.mrf.mxu1 }
  0xc0   :  { %v285_v49 = vpop.f32.mrf.mxu2  ;;  %v1228_v50 = vadd.f32 %v440_v48, %v231_v47 }
  0xc6   :  { %v491_v51 = vpop.f32.mrf.mxu3 }
  0xc7   :  { %v1230_v52 = vadd.f32 %v491_v51, %v282_v43  ;;  %v234_v53 = vpop.f32.mrf.mxu0  ;;  %v443_v54 = vpop.f32.mrf.mxu1 }
  0xc8   :  { %v1232_v55 = vadd.f32 %v443_v54, %v234_v53  ;;  %v288_v56 = vpop.f32.mrf.mxu2 }
  0xce   :  { %v494_v57 = vpop.f32.mrf.mxu3 }
  0xcf   :  { %v1234_v58 = vadd.f32 %v494_v57, %v285_v49  ;;  %v237_v59 = vpop.f32.mrf.mxu0  ;;  %v446_v60 = vpop.f32.mrf.mxu1 }
  0xd0   :  { %v1236_v61 = vadd.f32 %v446_v60, %v237_v59  ;;  %v291_v62 = vpop.f32.mrf.mxu2 }
  0xd6   :  { %v497_v63 = vpop.f32.mrf.mxu3 }
  0xd7   :  { %v240_v0 = vpop.f32.mrf.mxu0  ;;  %v449_v1 = vpop.f32.mrf.mxu1 }
  0xd8   :  { %v294_v3 = vpop.f32.mrf.mxu2 }
  0xde   :  { %v500_v2 = vpop.f32.mrf.mxu3 }
  0xdf   :  { %v243_v4 = vpop.f32.mrf.mxu0  ;;  %v452_v5 = vpop.f32.mrf.mxu1  ;;  %v501_v59 = vadd.f32 %v500_v2, %v291_v62 }
  0xe0   :  { %v297_v11 = vpop.f32.mrf.mxu2 }
  0xe6   :  { %v503_v6 = vpop.f32.mrf.mxu3 }
  0xe7   :  { %v246_v7 = vpop.f32.mrf.mxu0  ;;  %v455_v10 = vpop.f32.mrf.mxu1  ;;  %v504_v48 = vadd.f32 %v503_v6, %v294_v3 }
  0xe8   :  { %v300_v17 = vpop.f32.mrf.mxu2  ;;  %v456_v53 = vadd.f32 %v455_v10, %v246_v7  ;;  %v546_v7 = vadd.f32 %v1241_v25, %v501_v59  ;;  %v519_v59 = vadd.f32 %v1241_v25, %v1190_v8  ;;  %v729_v8 = vlaneseq }
  0xe9   :  { %v547_v60 = vadd.f32 %v1241_v25, %v504_v48 }
  0xea   :  { %v531_v3 = vadd.f32 %v1241_v25, %v456_v53  ;;  %vm731_vm2 = vcmp.lt.s32.totalorder %v729_v8, 256 }
  0xeb   :  { %v579_v10 = vmax.f32 %v547_v60, 0.0 }
  0xec   :  { %v563_v2 = vmax.f32 %v531_v3, 0.0 }
  0xee   :  { %v506_v12 = vpop.f32.mrf.mxu3 }
  0xef   :  { %v249_v13 = vpop.f32.mrf.mxu0  ;;  %v458_v16 = vpop.f32.mrf.mxu1  ;;  %v507_v37 = vadd.f32 %v506_v12, %v297_v11  ;;  %v453_v12 = vadd.f32 %v452_v5, %v243_v4  ;;  %v578_v4 = vmax.f32 %v546_v7, 0.0 }
  0xf0   :  { %v303_v23 = vpop.f32.mrf.mxu2  ;;  %v459_v43 = vadd.f32 %v458_v16, %v249_v13  ;;  %v498_v13 = vadd.f32 %v497_v63, %v288_v56  ;;  %v450_v16 = vadd.f32 %v449_v1, %v240_v0  ;;  %v544_v56 = vadd.f32 %v1241_v25, %v1234_v58 }
  0xf1   :  { %v548_v49 = vadd.f32 %v1241_v25, %v507_v37  ;;  %v530_v62 = vadd.f32 %v1241_v25, %v453_v12  ;;  %v528_v1 = vadd.f32 %v1241_v25, %v1236_v61  ;;  %v526_v61 = vadd.f32 %v1241_v25, %v1228_v50 }
  0xf2   :  { %v532_v54 = vadd.f32 %v1241_v25, %v459_v43  ;;  %v529_v5 = vadd.f32 %v1241_v25, %v450_v16  ;;  %v551_v12 = vmax.f32 %v519_v59, 0.0 }
  0xf3   :  { %v580_v11 = vmax.f32 %v548_v49, 0.0  ;;  %v560_v58 = vmax.f32 %v528_v1, 0.0 }
  0xf4   :  { %v564_v6 = vmax.f32 %v532_v54, 0.0 }
  0xf6   :  { %v509_v18 = vpop.f32.mrf.mxu3 }
  0xf7   :  { %v252_v19 = vpop.f32.mrf.mxu0  ;;  %v461_v21 = vpop.f32.mrf.mxu1  ;;  %v510_v27 = vadd.f32 %v509_v18, %v300_v17  ;;  %v545_v17 = vadd.f32 %v1241_v25, %v498_v13  ;;  %v562_v18 = vmax.f32 %v530_v62, 0.0 }
  0xf8   :  { %v462_v33 = vadd.f32 %v461_v21, %v252_v19  ;;  %v561_v19 = vmax.f32 %v529_v5, 0.0  ;;  %v543_v21 = vadd.f32 %v1241_v25, %v1230_v52 }
  0xf9   :  { %v549_v39 = vadd.f32 %v1241_v25, %v510_v27  ;;  %v577_v63 = vmax.f32 %v545_v17, 0.0  ;;  %v542_v27 = vadd.f32 %v1241_v25, %v1226_v46  ;;  %v558_v46 = vmax.f32 %v526_v61, 0.0 }
  0xfa   :  { %v533_v45 = vadd.f32 %v1241_v25, %v462_v33  ;;  %v525_v33 = vadd.f32 %v1241_v25, %v1224_v44 }
  0xfb   :  { %v581_v51 = vmax.f32 %v549_v39, 0.0 }
  0xfc   :  { %v565_v57 = vmax.f32 %v533_v45, 0.0  ;;  %v557_v37 = vmax.f32 %v525_v33, 0.0 }
  0xfe   :  { %v512_v24 = vpop.f32.mrf.mxu3 }
  0xff   :  { %v513_v29 = vadd.f32 %v512_v24, %v303_v23  ;;  %v255_v30 = vpop.f32.mrf.mxu0  ;;  %v464_v31 = vpop.f32.mrf.mxu1  ;;  %v576_v23 = vmax.f32 %v544_v56, 0.0  ;;  %v527_v24 = vadd.f32 %v1241_v25, %v1232_v55  ;;  %v574_v55 = vmax.f32 %v542_v27, 0.0 }
 0x100   :  { %v465_v36 = vadd.f32 %v464_v31, %v255_v30  ;;  %v541_v31 = vadd.f32 %v1241_v25, %v1222_v40  ;;  %v539_v40 = vadd.f32 %v1241_v25, %v1214_v28  ;;  %v522_v28 = vadd.f32 %v1241_v25, %v1212_v26 }
 0x101   :  { %v550_v35 = vadd.f32 %v1241_v25, %v513_v29  ;;  %v575_v29 = vmax.f32 %v543_v21, 0.0  ;;  %v559_v30 = vmax.f32 %v527_v24, 0.0 }
 0x102   :  { %v534_v42 = vadd.f32 %v1241_v25, %v465_v36  ;;  %v573_v50 = vmax.f32 %v541_v31, 0.0  ;;  %v524_v36 = vadd.f32 %v1241_v25, %v1220_v38  ;;  %v571_v38 = vmax.f32 %v539_v40, 0.0 }
 0x103   :  { %v582_v41 = vmax.f32 %v550_v35, 0.0  ;;  %v540_v35 = vadd.f32 %v1241_v25, %v1218_v34 }
 0x104   :  { %v566_v47 = vmax.f32 %v534_v42, 0.0  ;;  %v556_v34 = vmax.f32 %v524_v36, 0.0  ;;  %v538_v42 = vadd.f32 %v1241_v25, %v1210_v22  ;;  %v521_v22 = vadd.f32 %v1241_v25, %v1207_v20 }
 0x105   :  { %831 = vmatpush.xpose.msk.msrb.mxu3 %vm96_vm0, %v582_v41  ;;  %v572_v39 = vmax.f32 %v540_v35, 0.0  ;;  %v523_v41 = vadd.f32 %v1241_v25, %v1216_v32 }
 0x106   :  { %814 = vmatpush.xpose.msk.msrb.mxu2 %vm96_vm0, %v566_v47  ;;  %v570_v47 = vmax.f32 %v538_v42, 0.0  ;;  %v553_v54 = vmax.f32 %v521_v22, 0.0 }
 0x107   :  { %v258_v0 = vpop.f32.mrf.mxu0  ;;  %v555_v45 = vmax.f32 %v523_v41, 0.0  ;;  %v467_v49 = vpop.f32.mrf.mxu1 }
 0x108   :  { %v468_v53 = vadd.f32 %v467_v49, %v258_v0 }
 0x109   :  { %832 = vmatpush.xpose.msk.msrb.mxu3 %vm96_vm0, %v581_v51 }
 0x10a   :  { %815 = vmatpush.xpose.msk.msrb.mxu2 %vm96_vm0, %v565_v57  ;;  %v535_v20 = vadd.f32 %v1241_v25, %v468_v53 }
 0x10d   :  { %833 = vmatpush.xpose.msk.msrb.mxu3 %vm96_vm0, %v580_v11  ;;  %v567_v11 = vmax.f32 %v535_v20, 0.0 }
 0x10e   :  { %816 = vmatpush.xpose.msk.msrb.mxu2 %vm96_vm0, %v564_v6 }
 0x10f   :  { %v261_v52 = vpop.f32.mrf.mxu0 }
 0x110   :  { %v471_v32 = vadd.f32 %v1194_v9, %v261_v52  ;;  %v520_v9 = vadd.f32 %v1241_v25, %v1199_v14  ;;  %v583_v14 = vld [vmem:[%s1339_s5] sm:$0x1] }
 0x111   :  { %834 = vmatpush.xpose.msk.msrb.mxu3 %vm96_vm0, %v579_v10 }
 0x112   :  { %817 = vmatpush.xpose.msk.msrb.mxu2 %vm96_vm0, %v563_v2  ;;  %v536_v51 = vadd.f32 %v1241_v25, %v471_v32  ;;  %v552_v60 = vmax.f32 %v520_v9, 0.0 }
 0x114   :  { %v568_v57 = vmax.f32 %v536_v51, 0.0 }
 0x115   :  { %835 = vmatpush.xpose.msk.msrb.mxu3 %vm96_vm0, %v578_v4 }
 0x116   :  { %818 = vmatpush.xpose.msk.msrb.mxu2 %vm96_vm0, %v562_v18 }
 0x117   :  { %v264_v44 = vpop.f32.mrf.mxu0 }
 0x118   :  { %v474_v43 = vadd.f32 %v1202_v15, %v264_v44  ;;  %v554_v15 = vmax.f32 %v522_v28, 0.0 }
 0x119   :  { %836 = vmatpush.xpose.msk.msrb.mxu3 %vm96_vm0, %v577_v63 }
 0x11a   :  { %819 = vmatpush.xpose.msk.msrb.mxu2 %vm96_vm0, %v561_v19  ;;  %v537_v48 = vadd.f32 %v1241_v25, %v474_v43 }
 0x11c   :  { %v569_v26 = vmax.f32 %v537_v48, 0.0 }
 0x11d   :  { %837 = vmatpush.xpose.msk.msrb.mxu3 %vm96_vm0, %v576_v23 }
 0x11e   :  { %820 = vmatpush.xpose.msk.msrb.mxu2 %vm96_vm0, %v560_v58 }
 0x121   :  { %838 = vmatpush.xpose.msk.msrb.mxu3 %vm96_vm0, %v575_v29 }
 0x122   :  { %821 = vmatpush.xpose.msk.msrb.mxu2 %vm96_vm0, %v559_v30 }
 0x125   :  { %839 = vmatpush.xpose.msk.msrb.mxu3 %vm96_vm0, %v574_v55 }
 0x126   :  { %822 = vmatpush.xpose.msk.msrb.mxu2 %vm96_vm0, %v558_v46 }
 0x129   :  { %840 = vmatpush.xpose.msk.msrb.mxu3 %vm96_vm0, %v573_v50 }
 0x12a   :  { %823 = vmatpush.xpose.msk.msrb.mxu2 %vm96_vm0, %v557_v37 }
 0x12d   :  { %841 = vmatpush.xpose.msk.msrb.mxu3 %vm96_vm0, %v572_v39 }
 0x12e   :  { %824 = vmatpush.xpose.msk.msrb.mxu2 %vm96_vm0, %v556_v34 }
 0x131   :  { %842 = vmatpush.xpose.msk.msrb.mxu3 %vm96_vm0, %v571_v38 }
 0x132   :  { %825 = vmatpush.xpose.msk.msrb.mxu2 %vm96_vm0, %v555_v45 }
 0x135   :  { %843 = vmatpush.xpose.msk.msrb.mxu3 %vm96_vm0, %v570_v47 }
 0x136   :  { %826 = vmatpush.xpose.msk.msrb.mxu2 %vm96_vm0, %v554_v15 }
 0x139   :  { %844 = vmatpush.xpose.msk.msrb.mxu3 %vm96_vm0, %v569_v26 }
 0x13a   :  { %827 = vmatpush.xpose.msk.msrb.mxu2 %vm96_vm0, %v553_v54 }
 0x13d   :  { %845 = vmatpush.xpose.msk.msrb.mxu3 %vm96_vm0, %v568_v57 }
 0x13e   :  { %828 = vmatpush.xpose.msk.msrb.mxu2 %vm96_vm0, %v552_v60 }
 0x141   :  { %846 = vmatpush.xpose.msk.msrb.mxu3 %vm96_vm0, %v567_v11 }
 0x142   :  { %829 = vmatpush.xpose.msk.msrb.mxu2 %vm96_vm0, %v551_v12 }
 0x144   :  { %847 = vmatmul.msk.f32.vlgmr.msrb.gmra.mxu3 %vm96_vm0, %v583_v14 }
 0x145   :  { %830 = vmatmul.msk.f32.vlgmr.msrb.gmra.mxu2 %vm96_vm0, %v583_v14 }
 0x1c7   :  { %v720_v25 = vpop.f32.mrf.mxu3 }
 0x1c8   :  { %v725_v3 = vrot.slane %v720_v25, 7  ;;  %v700_v6 = vpop.f32.mrf.mxu2 }
 0x1ca   :  { %v727_v13 = vsel %vm726_vm1, %v700_v6, %v725_v3 }
 0x1cb   :  { %733 = vst.msk [vmem:[#allocation2] sm:$0x3] %vm731_vm2, %v727_v13 }
 0x1cc   :  { %744 = dma.vmem_to_hbm [thread:$0]  %s740_s13, 32, %s742_s16, [#allocation3]  }
 0x1cd   :  { %882 = dma.done.wait [#allocation3], 32  }
 0x1ce   :  { %883 = vsyncadd [#allocation3], 4294967264 }
 0x1cf   :  { %749 = vsyncpa [#allocation3], 1 }

</bundles_post_ra>
